<compile_context>
chip_gen: v7x
topology: tpu7x:2x2x1
jax: 0.10.0
libtpu: 0.0.40
codegen_flags: <defaults>
</compile_context>

<pallas_src>
import jax
import jax.numpy as jnp
from jax import lax
from jax.experimental import pallas as pl
from jax.experimental.pallas import tpu as pltpu

_LANE = 128
_DEFAULT_BLOCK_TARGET = 8 * 1024 * 1024      # ~8 MiB input block per grid step
_VMEM_BUDGET = 36 * 1024 * 1024              # 2*in + 2*out + acc must fit here
_VMEM_LIMIT = 48 * 1024 * 1024               # raised scoped-VMEM limit (big blocks)
_RAISE_LIMIT_ABOVE = 12 * 1024 * 1024        # only raise the limit when needed
_DEFAULT_MIN_KERNEL_BYTES = 1 * 1024 * 1024  # below this, XLA's fused reduce wins


def _round_up(x, m):
    return ((x + m - 1) // m) * m


def _divisors(n):
    ds = set()
    i = 1
    while i * i <= n:
        if n % i == 0:
            ds.add(i)
            ds.add(n // i)
        i += 1
    return sorted(ds)


def _sublane_pack(dtype):
    # Rows per 32-bit sublane word: 8 for f32, 16 for bf16, 32 for int8/fp8.
    return max(8, 32 // jnp.dtype(dtype).itemsize)


def _is_megacore():
    # v4/v7x have 2 TensorCores sharing the "parallel" grid axes; single-TC
    # chips (v5e/v6e) should never pay extra per-step overhead for a split.
    try:
        kind = jax.devices()[0].device_kind.lower()
    except Exception:
        return False
    return ("v7" in kind) or ("v4" in kind)


def _plan_tiles(B, T, D, dtype, target_bytes, megacore):
    """Pick (bb, tt) block sizes using padded (sublane/lane) byte accounting."""
    itemsize = jnp.dtype(dtype).itemsize
    pack = _sublane_pack(dtype)
    d_pad = _round_up(D, _LANE)

    def in_bytes(bb, tt):
        return bb * _round_up(tt, pack) * d_pad * itemsize

    def vmem_total(bb, tt):
        out_b = _round_up(bb, pack) * d_pad * itemsize
        acc_b = _round_up(bb, 8) * d_pad * 4
        return 2 * in_bytes(bb, tt) + 2 * out_b + acc_b

    # bb is the sublane dim of the 2-D output block, tt the sublane dim of the
    # input block: each must be a multiple of the packing or the full extent.
    bb_cands = [d for d in _divisors(B) if d == B or d % pack == 0]
    tt_cands = [d for d in _divisors(T) if d == T or d % pack == 0]

    feasible = [(bb, tt) for bb in bb_cands for tt in tt_cands
                if vmem_total(bb, tt) <= _VMEM_BUDGET]
    if not feasible:
        return None

    within = [c for c in feasible if in_bytes(*c) <= target_bytes]
    if within:
        # Largest block under the target; prefer full-T blocks (fewer acc passes).
        bb, tt = max(within, key=lambda c: (in_bytes(*c), c[1], c[0]))
    else:
        # Nothing fits the target: take the smallest feasible block.
        bb, tt = min(feasible, key=lambda c: (in_bytes(*c), -c[1], -c[0]))

    if megacore and B >= 2 and B // bb == 1:
        # Give the "parallel" B axis >= 2 (ideally even/balanced) steps on v7x.
        alts = [d for d in bb_cands if d < B and vmem_total(d, tt) <= _VMEM_BUDGET]
        if alts:
            even = [d for d in alts if (B // d) % 2 == 0]
            bb = max(even) if even else max(alts)

    return bb, tt, pack, vmem_total(bb, tt)


def _make_avg_kernel(bb, tt, D, T, pack):
    """Kernel over one (bb, tt, D) input block; accumulates into (bb, D) f32."""
    inv_t = 1.0 / float(T)
    d_pad = _round_up(D, _LANE)
    # Rows per group: keep the (grp, D) f32 partial sum vreg-resident (<=64 KiB).
    grp_cap = max(1, min(8, (64 * 1024) // (d_pad * 4)))
    grp = max(d for d in _divisors(bb) if d <= grp_cap)
    n_groups = bb // grp
    # T-chunk size: multiple of the dtype sublane packing, at most ~8 chunks.
    max_chunks = 8
    ch = pack * max(1, -(-tt // (pack * max_chunks)))

    def kernel(x_ref, o_ref, acc_ref):
        kt = pl.program_id(1)

        @pl.when(kt == 0)
        def _init():
            acc_ref[...] = jnp.zeros_like(acc_ref)

        def reduce_rows(b0):
            part = jnp.zeros((grp, D), jnp.float32)
            for t0 in range(0, tt, ch):
                c = min(ch, tt - t0)
                part = part + jnp.sum(
                    x_ref[pl.ds(b0, grp), pl.ds(t0, c), :].astype(jnp.float32),
                    axis=1,
                )
            # One VMEM accumulator touch per group per grid step.
            acc_ref[pl.ds(b0, grp), :] = acc_ref[pl.ds(b0, grp), :] + part

        if n_groups <= 8:
            for g in range(n_groups):
                reduce_rows(g * grp)
        else:
            def body(g, carry):
                reduce_rows(pl.multiple_of(g * grp, grp))
                return carry
            lax.fori_loop(0, n_groups, body, 0)

        @pl.when(kt == pl.num_programs(1) - 1)
        def _finalize():
            o_ref[...] = (acc_ref[...] * inv_t).astype(o_ref.dtype)

    return kernel


class ConsensusModule:
    """JAX/Pallas equivalent of the PyTorch ConsensusModule forward pass."""

    def __init__(self, consensus_type, dim=1, *,
                 block_target_bytes=_DEFAULT_BLOCK_TARGET,
                 min_kernel_bytes=_DEFAULT_MIN_KERNEL_BYTES):
        self.consensus_type = ("identity" if consensus_type == "rnn"
                               else consensus_type)
        self.dim = dim
        self.block_target_bytes = block_target_bytes
        self.min_kernel_bytes = min_kernel_bytes

    def _avg_pallas(self, x):
        B, T, D = x.shape
        plan = _plan_tiles(B, T, D, x.dtype, self.block_target_bytes,
                           _is_megacore())
        if plan is None:
            return None
        bb, tt, pack, vmem_est = plan

        cp_kwargs = {"dimension_semantics": ("parallel", "arbitrary")}
        if vmem_est > _RAISE_LIMIT_ABOVE:
            cp_kwargs["vmem_limit_bytes"] = _VMEM_LIMIT

        kernel = _make_avg_kernel(bb, tt, D, T, pack)
        out2d = pl.pallas_call(
            kernel,
            out_shape=jax.ShapeDtypeStruct((B, D), x.dtype),
            grid=(B // bb, T // tt),
            in_specs=[pl.BlockSpec((bb, tt, D), lambda b, k: (b, k, 0))],
            out_specs=pl.BlockSpec((bb, D), lambda b, k: (b, 0)),
            scratch_shapes=[pltpu.VMEM((bb, D), jnp.float32)],
            compiler_params=pltpu.CompilerParams(**cp_kwargs),
        )(x)
        # Free metadata reshape back to the keepdim=True layout.
        return out2d.reshape(B, 1, D)

    def __call__(self, x):
        if self.consensus_type == "identity":
            return x                       # pass-through; no kernel, no HBM trip
        if self.consensus_type != "avg":
            return None                    # matches the PyTorch module

        def fallback():
            return jnp.mean(x, axis=self.dim, keepdims=True)

        if x.ndim != 3 or self.dim != 1:
            return fallback()
        itemsize = jnp.dtype(x.dtype).itemsize
        if x.size * itemsize < self.min_kernel_bytes:
            # Launch + pipeline prologue costs more than the whole reduce here.
            return fallback()
        out = self._avg_pallas(x)
        return out if out is not None else fallback()


if __name__ == "__main__":
    key = jax.random.PRNGKey(0)
    k1, k2, k3 = jax.random.split(key, 3)

    # 1) Tiny shape typical of the module (routes through the XLA fallback).
    B, T, D = 2, 8, 32
    x = jax.random.normal(k1, (B, T, D), dtype=jnp.float32)
    ref = jnp.mean(x, axis=1, keepdims=True)
    mod = ConsensusModule("avg", dim=1)
    out = jax.block_until_ready(mod(x))
    assert out.shape == (B, 1, D)
    assert jnp.allclose(out, ref, atol=1e-5, rtol=1e-5)

    # 'rnn' (-> identity) consensus: pure pass-through, no kernel.
    idm = ConsensusModule("rnn", dim=1)
    out_id = jax.block_until_ready(idm(x))
    assert out_id.shape == (B, T, D) and jnp.allclose(out_id, x)

    # 2) Same tiny shape forced through the Pallas kernel (single block).
    mod_k = ConsensusModule("avg", dim=1, min_kernel_bytes=0)
    out_k = jax.block_until_ready(mod_k(x))
    assert jnp.allclose(out_k, ref, atol=1e-5, rtol=1e-5)

    # 3) Multi-step "parallel" B grid (bb=8 blocks) with lane-dense D.
    B2, T2, D2 = 16, 8, 256
    x2 = jax.random.normal(k2, (B2, T2, D2), dtype=jnp.float32)
    mod_b = ConsensusModule("avg", dim=1, min_kernel_bytes=0,
                            block_target_bytes=32 * 1024)
    out2 = jax.block_until_ready(mod_b(x2))
    ref2 = jnp.mean(x2, axis=1, keepdims=True)
    assert out2.shape == (B2, 1, D2)
    assert jnp.allclose(out2, ref2, atol=1e-5, rtol=1e-5)

    # 4) T-tiled path: 2 "arbitrary" T steps exercising the f32 accumulator.
    B3, T3, D3 = 2, 32, 128
    x3 = jax.random.normal(k3, (B3, T3, D3), dtype=jnp.float32)
    mod_t = ConsensusModule("avg", dim=1, min_kernel_bytes=0,
                            block_target_bytes=16 * 1024)
    out3 = jax.block_until_ready(mod_t(x3))
    ref3 = jnp.mean(x3, axis=1, keepdims=True)
    assert out3.shape == (B3, 1, D3)
    assert jnp.allclose(out3, ref3, atol=1e-5, rtol=1e-5)

    print("KERNEL_OK")
</pallas_src>

<mosaic_0001>
module attributes {stable_mosaic.version = 11 : i64} {
  func.func @kernel(%arg0: i32, %arg1: i32, %arg2: memref<2x8x32xf32, #tpu.memory_space<vmem>>, %arg3: memref<2x32xf32, #tpu.memory_space<vmem>>, %arg4: memref<2x32xf32, #tpu.memory_space<vmem>>) attributes {dimension_semantics = [#tpu.dimension_semantics<parallel>, #tpu.dimension_semantics<arbitrary>], iteration_bounds = array<i64: 1, 1>, scalar_prefetch = 0 : i64, scratch_operands = 1 : i64, tpu.core_type = #tpu.core_type<tc>, window_params = [{transform_indices = @transform_0, window_bounds = array<i64: 2, 8, 32>}, {transform_indices = @transform_1, window_bounds = array<i64: 2, 32>}]} {
    %c0_i32 = arith.constant 0 : i32
    %0 = arith.cmpi eq, %arg1, %c0_i32 : i32
    %1 = arith.extui %0 : i1 to i32
    %c0_i32_0 = arith.constant 0 : i32
    %2 = arith.cmpi ne, %1, %c0_i32_0 : i32
    scf.if %2 {
      %cst_10 = arith.constant 0.000000e+00 : f32
      %13 = vector.broadcast %cst_10 : f32 to vector<2x32xf32>
      %c0_11 = arith.constant 0 : index
      %c0_12 = arith.constant 0 : index
      %14 = vector.load %arg4[%c0_11, %c0_12] : memref<2x32xf32, #tpu.memory_space<vmem>>, vector<2x32xf32>
      tpu.vector_store %arg4[%c0_11, %c0_12], %13 {strides = array<i32>} : memref<2x32xf32, #tpu.memory_space<vmem>>, vector<2x32xf32>,
    } else {
    }
    %cst = arith.constant 0.000000e+00 : f32
    %3 = vector.broadcast %cst : f32 to vector<2x32xf32>
    %c0 = arith.constant 0 : index
    %c0_1 = arith.constant 0 : index
    %c0_2 = arith.constant 0 : index
    %4 = vector.load %arg2[%c0, %c0_1, %c0_2] : memref<2x8x32xf32, #tpu.memory_space<vmem>>, vector<2x8x32xf32>
    %cst_3 = arith.constant dense<0.000000e+00> : vector<2x32xf32>
    %5 = vector.multi_reduction <add>, %4, %cst_3 [1] : vector<2x8x32xf32> to vector<2x32xf32>
    %6 = arith.addf %3, %5 : vector<2x32xf32>
    %c0_4 = arith.constant 0 : index
    %c0_5 = arith.constant 0 : index
    %7 = vector.load %arg4[%c0_4, %c0_5] : memref<2x32xf32, #tpu.memory_space<vmem>>, vector<2x32xf32>
    %8 = arith.addf %7, %6 : vector<2x32xf32>
    %c0_6 = arith.constant 0 : index
    %c0_7 = arith.constant 0 : index
    %9 = vector.load %arg4[%c0_6, %c0_7] : memref<2x32xf32, #tpu.memory_space<vmem>>, vector<2x32xf32>
    tpu.vector_store %arg4[%c0_6, %c0_7], %8 {strides = array<i32>} : memref<2x32xf32, #tpu.memory_space<vmem>>, vector<2x32xf32>,
    %c0_i32_8 = arith.constant 0 : i32
    %10 = arith.cmpi eq, %arg1, %c0_i32_8 : i32
    %11 = arith.extui %10 : i1 to i32
    %c0_i32_9 = arith.constant 0 : i32
    %12 = arith.cmpi ne, %11, %c0_i32_9 : i32
    scf.if %12 {
      %c0_10 = arith.constant 0 : index
      %c0_11 = arith.constant 0 : index
      %13 = vector.load %arg4[%c0_10, %c0_11] : memref<2x32xf32, #tpu.memory_space<vmem>>, vector<2x32xf32>
      %cst_12 = arith.constant 1.250000e-01 : f32
      %14 = vector.broadcast %cst_12 : f32 to vector<2x32xf32>
      %15 = arith.mulf %13, %14 : vector<2x32xf32>
      %c0_13 = arith.constant 0 : index
      %c0_14 = arith.constant 0 : index
      %16 = vector.load %arg3[%c0_13, %c0_14] : memref<2x32xf32, #tpu.memory_space<vmem>>, vector<2x32xf32>
      tpu.vector_store %arg3[%c0_13, %c0_14], %15 {strides = array<i32>} : memref<2x32xf32, #tpu.memory_space<vmem>>, vector<2x32xf32>,
    } else {
    }
    return
  }
  func.func @transform_0(%arg0: i32, %arg1: i32) -> (i32, i32, i32) {
    %c0_i32 = arith.constant 0 : i32
    %c0_i32_0 = arith.constant 0 : i32
    return %arg0, %arg1, %c0_i32 : i32, i32, i32
  }
  func.func @transform_1(%arg0: i32, %arg1: i32) -> (i32, i32) {
    %c0_i32 = arith.constant 0 : i32
    %c0_i32_0 = arith.constant 0 : i32
    return %arg0, %c0_i32 : i32, i32
  }
}

</mosaic_0001>

<bundles_post_ra>
// kernel: tpu_custom_call.1
= control target key start
LH: loop header
LB: loop body
LE: loop exit
PB: predicated region body
PF: predicated region fallthrough
CT: control target
= control target key end

     0   :  { %6 = vsyncpa [#allocation4], 0  ;;  %s173_s0 = inlined_call_operand.hbm [shape: f32[2,8,32], index: 0, kind: input, shape index: {}]   ;;  %s174_s1 = inlined_call_operand.hbm [shape: f32[2,32], index: 1, kind: output, shape index: {}]  }
   0x1   :  { %7 = vsyncpa [#allocation5], 0  ;;  %s131_s6 = smov [#allocation3]   ;;  %s83_s10 = scalar_lea.hbm %s173_s0, 256 }
   0x2   :  { %s13_s7 = sshll.u32 %s131_s6, 4  ;;  %p84_p0 = scmp.ne.s32.totalorder %s173_s0, %s83_s10  ;;  %s14_s7 = int_to_ptr.vmem [resolvable:$true] %s13_s7 }
   0x3   :  { %p87_p1 = scmp.lt.u32.totalorder %s83_s10, %s173_s0 }
   0x5   :  { %p89_p2 = pnand %p87_p1, %p84_p0 }
   0x7   :  { %92 = shalt.err (!%p89_p2)
}
   0x8   :  { %s93_s15 = scalar_lea.vmem %s14_s7, 256  ;;  %p98_p4 = scmp.lt.s32.totalorder %s14_s7, %s14_s7 }
   0x9   :  { %p94_p3 = scmp.ne.s32.totalorder %s14_s7, %s93_s15  ;;  %p99_p5 = scmp.lt.s32.totalorder %s93_s15, %s93_s15 }
   0xb   :  { %p100_p6 = por %p99_p5, %p98_p4 }
   0xd   :  { %p101_p7 = pnand %p100_p6, %p94_p3 }
   0xf   :  { %104 = shalt.err (!%p101_p7)
}
  0x10   :  { %s132_s16 = smov 128   ;;  %s133_s17 = smov 8  }
  0x11   :  { %19 = dma.hbm_to_vmem [thread:$0]  %s173_s0, 256, %s14_s7, [#allocation4], %s132_s16, %s132_s16, %s133_s17  }
  0x12   :  { %127 = dma.done.wait [#allocation4], 256  }
  0x13   :  { %128 = vsyncadd [#allocation4], 4294967040  ;;  %vm27_vm0 = vcmask 254976   ;;  %v134_v0 = vmov 0.0   ;;  %vm31_vm1 = vcmask 261120   ;;  %v29_v1 = vld [vmem:[#allocation3] sm:$0xff] }
  0x14   :  { %28 = vst.msk [vmem:[#allocation2] sm:$0x3] %vm27_vm0, %v134_v0  ;;  %v30_v2 = vld [vmem:[#allocation3 + $0x8] sm:$0xff]  ;;  %v32_v3 = vsel %vm31_vm1, %v29_v1, 0.0  ;;  %vm51_vm2 = vcmask 1041409   ;;  %s135_s0 = smov [#allocation6]  }
  0x15   :  { %v39_v4 = vsel %vm31_vm1, %v30_v2, 0.0  ;;  %v33_v5 = vrot.slane %v32_v3, 4  ;;  %s69_s20 = sshll.u32 %s135_s0, 4  ;;  %s70_s20 = int_to_ptr.vmem [resolvable:$true] %s69_s20 }
  0x16   :  { %v40_v6 = vrot.slane %v39_v4, 4  ;;  %s105_s21 = scalar_lea.vmem %s70_s20, 32  ;;  %p110_p9 = scmp.lt.s32.totalorder %s70_s20, %s70_s20 }
  0x17   :  { %v34_v7 = vadd.f32 %v33_v5, %v32_v3  ;;  %p106_p8 = scmp.ne.s32.totalorder %s70_s20, %s105_s21  ;;  %p111_p10 = scmp.lt.s32.totalorder %s105_s21, %s105_s21 }
  0x18   :  { %v41_v8 = vadd.f32 %v40_v6, %v39_v4 }
  0x19   :  { %v35_v9 = vrot.slane %v34_v7, 2  ;;  %p112_p11 = por %p111_p10, %p110_p9 }
  0x1a   :  { %v42_v10 = vrot.slane %v41_v8, 2 }
  0x1b   :  { %v36_v11 = vadd.f32 %v35_v9, %v34_v7  ;;  %v48_v17 = vld [vmem:[#allocation2] sm:$0x3]  ;;  %p113_p12 = pnand %p112_p11, %p106_p8 }
  0x1c   :  { %v43_v12 = vadd.f32 %v42_v10, %v41_v8 }
  0x1d   :  { %v37_v13 = vrot.slane %v36_v11, 1 }
  0x1e   :  { %v44_v14 = vrot.slane %v43_v12, 1 }
  0x1f   :  { %v38_v15 = vadd.f32 %v37_v13, %v36_v11 }
  0x20   :  { %v45_v16 = vadd.f32 %v44_v14, %v43_v12 }
  0x22   :  { %v52_v18 = vsel %vm51_vm2, %v45_v16, %v38_v15 }
  0x23   :  { %v54_v19 = vadd.f32 %v52_v18, %v48_v17 }
  0x25   :  { %56 = vst.msk [vmem:[#allocation2] sm:$0x3] %vm27_vm0, %v54_v19 }
  0x2c   :  { %v60_v20 = vld [vmem:[#allocation2] sm:$0x3] }
  0x2d   :  { %v61_v21 = vmul.f32 0.125, %v60_v20 }
  0x2f   :  { %62 = vst.msk [vmem:[#allocation6] sm:$0x3] %vm27_vm0, %v61_v21 }
  0x30   :  { %116 = shalt.err (!%p113_p12)
}
  0x31   :  { %s117_s24 = scalar_lea.hbm %s174_s1, 32 }
  0x32   :  { %p118_p13 = scmp.ne.s32.totalorder %s174_s1, %s117_s24  ;;  %p121_p0 = scmp.lt.u32.totalorder %s117_s24, %s174_s1 }
  0x34   :  { %p123_p1 = pnand %p121_p0, %p118_p13 }
  0x36   :  { %126 = shalt.err (!%p123_p1)
}
  0x37   :  { %72 = dma.vmem_to_hbm [thread:$0]  %s70_s20, 32, %s174_s1, [#allocation5]  }
  0x38   :  { %129 = dma.done.wait [#allocation5], 32  }
  0x39   :  { %130 = vsyncadd [#allocation5], 4294967264 }
  0x3a   :  { %76 = vsyncpa [#allocation4], 1 }
  0x3b   :  { %77 = vsyncpa [#allocation5], 1 }

</bundles_post_ra>
